<compile_context>
chip_gen: v7x
topology: tpu7x:2x2x1
jax: 0.10.0
libtpu: 0.0.40
codegen_flags: <defaults>
</compile_context>

<pallas_src>
import functools

import jax
import jax.numpy as jnp
import numpy as np
from jax.experimental import pallas as pl
from jax.experimental.pallas import tpu as pltpu

SMOOTH = 1e-6


def _dice_partial_kernel(logits_ref, target_ref, out_ref, *,
                         tiles_per_split: int, hw: int, any_mask: bool):
    """Accumulate per-class [intersection ; union] partial sums for one (batch, split)."""
    p = pl.program_id(2)

    @pl.when(p == 0)
    def _init():
        out_ref[...] = jnp.zeros_like(out_ref)

    x = logits_ref[0].astype(jnp.float32)        # (C, TS, 128); f32 math (v5e-safe)
    tgt = target_ref[0]                          # (TS, 128) int32
    c, ts, nl = x.shape

    # Softmax over the class axis (leading, untiled => element-wise VPU work; the
    # exact reciprocal runs on the otherwise-idle EUP slot).
    m = jnp.max(x, axis=0, keepdims=True)        # (1, TS, 128)
    e = jnp.exp(x - m)
    s = jnp.sum(e, axis=0, keepdims=True)        # (1, TS, 128)
    probs = e * pl.reciprocal(s)                 # (C, TS, 128), exact reciprocal

    def _accumulate(valid):
        zero = jnp.float32(0.0)
        for k in range(c):                       # static loop: no (C,TS,128) iota
            pk = probs[k]                                        # (TS, 128)
            hk = (tgt == k).astype(jnp.float32)                  # one-hot slice, reused
            inter = pk * hk
            union = pk + hk
            if valid is not None:
                # Mask BEFORE accumulating (padded pixels contribute nothing).
                inter = jnp.where(valid, inter, zero)
                union = jnp.where(valid, union, zero)
            # Per-tile sublane-group reduction: (TS,128) -> (8,128) via pure vreg
            # adds (VALU, no XLU) so the accumulator read-modify-write is only
            # 2 vregs per class per tile instead of 2 * TS/8.
            if ts > 8:
                inter = inter.reshape(ts // 8, 8, nl).sum(axis=0)
                union = union.reshape(ts // 8, 8, nl).sum(axis=0)
            out_ref[0, k] += inter               # intersection rows [0, C)
            out_ref[0, c + k] += union           # union rows        [C, 2C)

    if any_mask:
        g = pl.program_id(1) * tiles_per_split + p           # global pixel-tile index
        tile_has_tail = (g + 1) * (ts * nl) > hw             # only padded tiles pay for masking

        @pl.when(tile_has_tail)
        def _masked_tail():
            sub = jax.lax.broadcasted_iota(jnp.int32, (ts, nl), 0)
            lane = jax.lax.broadcasted_iota(jnp.int32, (ts, nl), 1)
            pix = (g * ts + sub) * nl + lane
            _accumulate(pix < hw)

        @pl.when(jnp.logical_not(tile_has_tail))
        def _fast():
            _accumulate(None)
    else:
        _accumulate(None)


def _round_up(v: int, m: int) -> int:
    return ((v + m - 1) // m) * m


def _pick_sublane_tile(rows: int, num_classes: int, logits_itemsize: int) -> int:
    """Pick TS (sublane rows of 128 pixels per tile).

    Temp-aware budget: double-buffered input blocks plus ~6 f32 (C, TS, 128)
    element-wise temporaries (x_f32 / e / probs / per-class products).  Capped at
    512 rows (already ~85% of HBM roofline); aligned to the logits dtype packing.
    """
    align = 8 if logits_itemsize >= 4 else (16 if logits_itemsize == 2 else 32)
    bytes_per_row = (2 * num_classes * logits_itemsize   # double-buffered logits block
                     + 2 * 4                             # double-buffered int32 target block
                     + 6 * num_classes * 4               # softmax / per-class f32 temporaries
                     ) * 128
    budget = 24 * 1024 * 1024
    cap = min(512, budget // bytes_per_row)
    cap = max(align, cap - cap % align)
    if rows <= cap:
        return _round_up(rows, align)
    # Prefer a tile that divides the per-split row count so only the hw-padding
    # tile (if any) ever takes the masked path.
    for ts in range(cap, max(align, cap // 2) - 1, -align):
        if rows % ts == 0:
            return ts
    return cap


def _vmem_limit_bytes() -> int:
    """Generation-aware scoped-VMEM limit (v7x: 64 MiB physical; v5e/v6e: 128 MiB)."""
    try:
        cap = int(pltpu.get_tpu_info().vmem_capacity_bytes)
    except Exception:
        cap = 64 * 1024 * 1024           # conservative fallback: v7x physical VMEM
    return int(min(max(cap - 16 * 1024 * 1024, 32 * 1024 * 1024), 96 * 1024 * 1024))


@jax.jit
def dice_loss(logits: jax.Array, target: jax.Array) -> jax.Array:
    """logits: (B, C, H, W) float (f32 or bf16); target: (B, H, W) int. Scalar f32 loss."""
    B, C, H, W = logits.shape
    HW = H * W
    NP = pl.cdiv(HW, 128)                 # rows of 128 pixels

    # Odd batch (in particular B == 1): split the pixel sweep into two independent
    # halves on a second "parallel" grid axis so both v7x TensorCores stay busy.
    NSPLIT = 2 if (B % 2 == 1) else 1
    rows_per_split = pl.cdiv(NP, NSPLIT)
    TS = _pick_sublane_tile(rows_per_split, C, jnp.dtype(logits.dtype).itemsize)
    NT = pl.cdiv(rows_per_split, TS)      # pixel tiles per split
    ROWS = NSPLIT * NT * TS               # padded row count: every block read is in-bounds
    HW_PAD = ROWS * 128
    any_mask = HW_PAD != HW

    # Free, contiguous reshapes only (no NCHW->NHWC transpose); copies only if padding.
    x = logits.reshape(B, C, HW)
    t = target.astype(jnp.int32).reshape(B, HW)
    if any_mask:
        x = jnp.pad(x, ((0, 0), (0, 0), (0, HW_PAD - HW)))
        t = jnp.pad(t, ((0, 0), (0, HW_PAD - HW)))
    x = x.reshape(B, C, ROWS, 128)
    t = t.reshape(B, ROWS, 128)

    # Lane-dense partials: rows [0, C) = intersection, rows [C, 2C) = union.
    # NOTE: if TS ever ends up <= 256 with many tiles, pipeline_mode=pl.Buffered(3)
    # on the logits spec is worth sweeping; default double-buffering is enough here.
    partials = pl.pallas_call(
        functools.partial(_dice_partial_kernel,
                          tiles_per_split=NT, hw=HW, any_mask=any_mask),
        out_shape=jax.ShapeDtypeStruct((B * NSPLIT, 2 * C, 8, 128), jnp.float32),
        grid_spec=pltpu.PrefetchScalarGridSpec(
            num_scalar_prefetch=0,
            grid=(B, NSPLIT, NT),
            in_specs=[
                pl.BlockSpec((1, C, TS, 128), lambda b, h, p: (b, 0, h * NT + p, 0)),
                pl.BlockSpec((1, TS, 128), lambda b, h, p: (b, h * NT + p, 0)),
            ],
            out_specs=pl.BlockSpec((1, 2 * C, 8, 128),
                                   lambda b, h, p: (b * NSPLIT + h, 0, 0, 0)),
        ),
        compiler_params=pltpu.CompilerParams(
            dimension_semantics=("parallel", "parallel", "arbitrary"),
            vmem_limit_bytes=_vmem_limit_bytes(),
        ),
    )(x, t)

    # Tiny final combine (cross-lane reduce + dice) in plain JAX.
    inter = jnp.sum(partials[:, :C], axis=(0, 2, 3))      # (C,)
    union = jnp.sum(partials[:, C:], axis=(0, 2, 3))      # (C,)
    dice = (2.0 * inter + SMOOTH) / (union + SMOOTH)
    return 1.0 - jnp.mean(dice)


def dice_loss_ref(logits: jax.Array, target: jax.Array) -> jax.Array:
    """Pure-JAX reference mirroring the PyTorch module."""
    probs = jax.nn.softmax(logits.astype(jnp.float32), axis=1)       # (B, C, H, W)
    C = probs.shape[1]
    one_hot = jax.nn.one_hot(target, C, dtype=jnp.float32)           # (B, H, W, C)
    one_hot = jnp.transpose(one_hot, (0, 3, 1, 2))                   # (B, C, H, W)
    intersection = jnp.sum(probs * one_hot, axis=(0, 2, 3))
    union = jnp.sum(probs, axis=(0, 2, 3)) + jnp.sum(one_hot, axis=(0, 2, 3))
    dice = (2.0 * intersection + SMOOTH) / (union + SMOOTH)
    return 1.0 - jnp.mean(dice)


if __name__ == "__main__":
    key = jax.random.PRNGKey(0)

    def _check(b, c, h, w, dtype=jnp.float32):
        kl, kt = jax.random.split(jax.random.fold_in(key, b * 100003 + h * 131 + w))
        logits = jax.random.normal(kl, (b, c, h, w), dtype=jnp.float32).astype(dtype)
        target = jax.random.randint(kt, (b, h, w), 0, c, dtype=jnp.int32)
        out = jax.block_until_ready(dice_loss(logits, target))
        ref = jax.block_until_ready(dice_loss_ref(logits, target))
        np.testing.assert_allclose(np.asarray(out), np.asarray(ref), rtol=1e-4, atol=1e-6)

    _check(2, 4, 16, 16)                 # masked tail tile, single tile, even batch
    _check(1, 4, 32, 32)                 # odd batch -> 2-way pixel split (both v7x cores)
    _check(2, 4, 256, 512)               # multi-tile unmasked fast path (TS=512, NT=2)
    _check(2, 4, 16, 16, jnp.bfloat16)   # bf16 logits path (16-sublane alignment)

    print("KERNEL_OK")
</pallas_src>

<mosaic_0001>
module attributes {stable_mosaic.version = 11 : i64} {
  func.func @_dice_partial_kernel(%arg0: i32, %arg1: i32, %arg2: i32, %arg3: memref<1x4x8x128xf32, #tpu.memory_space<vmem>>, %arg4: memref<1x8x128xi32, #tpu.memory_space<vmem>>, %arg5: memref<1x8x8x128xf32, #tpu.memory_space<vmem>>) attributes {dimension_semantics = [#tpu.dimension_semantics<parallel>, #tpu.dimension_semantics<parallel>, #tpu.dimension_semantics<arbitrary>], iteration_bounds = array<i64: 2, 1, 1>, scalar_prefetch = 0 : i64, scratch_operands = 0 : i64, tpu.core_type = #tpu.core_type<tc>, window_params = [{transform_indices = @transform_0, window_bounds = array<i64: 1, 4, 8, 128>}, {transform_indices = @transform_1, window_bounds = array<i64: 1, 8, 128>}, {transform_indices = @transform_2, window_bounds = array<i64: 1, 8, 8, 128>}]} {
    %c0_i32 = arith.constant 0 : i32
    %0 = arith.cmpi eq, %arg2, %c0_i32 : i32
    %1 = arith.extui %0 : i1 to i32
    %c0_i32_0 = arith.constant 0 : i32
    %2 = arith.cmpi ne, %1, %c0_i32_0 : i32
    scf.if %2 {
      %cst_11 = arith.constant 0.000000e+00 : f32
      %27 = vector.broadcast %cst_11 : f32 to vector<1x8x8x128xf32>
      %c0_12 = arith.constant 0 : index
      %c0_13 = arith.constant 0 : index
      %c0_14 = arith.constant 0 : index
      %c0_15 = arith.constant 0 : index
      %28 = vector.load %arg5[%c0_12, %c0_13, %c0_14, %c0_15] : memref<1x8x8x128xf32, #tpu.memory_space<vmem>>, vector<1x8x8x128xf32>
      tpu.vector_store %arg5[%c0_12, %c0_13, %c0_14, %c0_15], %27 {strides = array<i32>} : memref<1x8x8x128xf32, #tpu.memory_space<vmem>>, vector<1x8x8x128xf32>,
    } else {
    }
    %c0 = arith.constant 0 : index
    %c0_1 = arith.constant 0 : index
    %c0_2 = arith.constant 0 : index
    %c0_3 = arith.constant 0 : index
    %3 = vector.load %arg3[%c0, %c0_1, %c0_2, %c0_3] : memref<1x4x8x128xf32, #tpu.memory_space<vmem>>, vector<1x4x8x128xf32>
    %4 = vector.shape_cast %3 : vector<1x4x8x128xf32> to vector<4x8x128xf32>
    %c0_4 = arith.constant 0 : index
    %c0_5 = arith.constant 0 : index
    %c0_6 = arith.constant 0 : index
    %5 = vector.load %arg4[%c0_4, %c0_5, %c0_6] : memref<1x8x128xi32, #tpu.memory_space<vmem>>, vector<1x8x128xi32>
    %6 = vector.shape_cast %5 : vector<1x8x128xi32> to vector<8x128xi32>
    %cst = arith.constant dense<0xFF800000> : vector<8x128xf32>
    %7 = vector.multi_reduction <maximumf>, %4, %cst [0] : vector<4x8x128xf32> to vector<8x128xf32>
    %8 = vector.shape_cast %7 : vector<8x128xf32> to vector<1x8x128xf32>
    %9 = vector.broadcast %8 : vector<1x8x128xf32> to vector<4x8x128xf32>
    %10 = arith.subf %4, %9 : vector<4x8x128xf32>
    %11 = math.exp %10 : vector<4x8x128xf32>
    %cst_7 = arith.constant dense<0.000000e+00> : vector<8x128xf32>
    %12 = vector.multi_reduction <add>, %11, %cst_7 [0] : vector<4x8x128xf32> to vector<8x128xf32>
    %13 = vector.shape_cast %12 : vector<8x128xf32> to vector<1x8x128xf32>
    %14 = tpu.reciprocal %13 : vector<1x8x128xf32> -> vector<1x8x128xf32>
    %15 = vector.broadcast %14 : vector<1x8x128xf32> to vector<4x8x128xf32>
    %16 = arith.mulf %11, %15 : vector<4x8x128xf32>
    %c1_i32 = arith.constant 1 : i32
    %17 = arith.muli %arg1, %c1_i32 : i32
    %18 = arith.addi %17, %arg2 : i32
    %c1_i32_8 = arith.constant 1 : i32
    %19 = arith.addi %18, %c1_i32_8 : i32
    %c1024_i32 = arith.constant 1024 : i32
    %20 = arith.muli %19, %c1024_i32 : i32
    %c256_i32 = arith.constant 256 : i32
    %21 = arith.cmpi sgt, %20, %c256_i32 : i32
    %22 = arith.extui %21 : i1 to i32
    %c0_i32_9 = arith.constant 0 : i32
    %23 = arith.cmpi ne, %22, %c0_i32_9 : i32
    scf.if %23 {
      %27 = tpu.iota {dimensions = array<i32: 0>} : vector<8x128xi32>
      %28 = tpu.iota {dimensions = array<i32: 1>} : vector<8x128xi32>
      %c8_i32 = arith.constant 8 : i32
      %29 = arith.muli %18, %c8_i32 : i32
      %30 = vector.broadcast %29 : i32 to vector<8x128xi32>
      %31 = arith.addi %30, %27 : vector<8x128xi32>
      %c128_i32 = arith.constant 128 : i32
      %32 = vector.broadcast %c128_i32 : i32 to vector<8x128xi32>
      %33 = arith.muli %31, %32 : vector<8x128xi32>
      %34 = arith.addi %33, %28 : vector<8x128xi32>
      %c256_i32_11 = arith.constant 256 : i32
      %35 = vector.broadcast %c256_i32_11 : i32 to vector<8x128xi32>
      %36 = arith.cmpi slt, %34, %35 : vector<8x128xi32>
      %37 = vector.extract_strided_slice %16 {offsets = [0, 0, 0], sizes = [1, 8, 128], strides = [1, 1, 1]} : vector<4x8x128xf32> to vector<1x8x128xf32>
      %38 = vector.shape_cast %37 : vector<1x8x128xf32> to vector<8x128xf32>
      %c0_i32_12 = arith.constant 0 : i32
      %39 = vector.broadcast %c0_i32_12 : i32 to vector<8x128xi32>
      %40 = arith.cmpi eq, %6, %39 : vector<8x128xi32>
      %41 = arith.extui %40 : vector<8x128xi1> to vector<8x128xi32>
      %42 = arith.sitofp %41 : vector<8x128xi32> to vector<8x128xf32>
      %43 = arith.mulf %38, %42 : vector<8x128xf32>
      %44 = arith.addf %38, %42 : vector<8x128xf32>
      %cst_13 = arith.constant 0.000000e+00 : f32
      %45 = vector.broadcast %cst_13 : f32 to vector<8x128xf32>
      %46 = arith.select %36, %43, %45 : vector<8x128xi1>, vector<8x128xf32>
      %cst_14 = arith.constant 0.000000e+00 : f32
      %47 = vector.broadcast %cst_14 : f32 to vector<8x128xf32>
      %48 = arith.select %36, %44, %47 : vector<8x128xi1>, vector<8x128xf32>
      %c0_15 = arith.constant 0 : index
      %c0_16 = arith.constant 0 : index
      %c0_17 = arith.constant 0 : index
      %c0_18 = arith.constant 0 : index
      %49 = vector.load %arg5[%c0_15, %c0_16, %c0_17, %c0_18] : memref<1x8x8x128xf32, #tpu.memory_space<vmem>>, vector<1x1x8x128xf32>
      %50 = vector.shape_cast %49 : vector<1x1x8x128xf32> to vector<8x128xf32>
      %51 = arith.addf %50, %46 : vector<8x128xf32>
      %c0_19 = arith.constant 0 : index
      %c0_20 = arith.constant 0 : index
      %c0_21 = arith.constant 0 : index
      %c0_22 = arith.constant 0 : index
      %52 = vector.load %arg5[%c0_19, %c0_20, %c0_21, %c0_22] : memref<1x8x8x128xf32, #tpu.memory_space<vmem>>, vector<1x1x8x128xf32>
      %53 = vector.shape_cast %52 : vector<1x1x8x128xf32> to vector<8x128xf32>
      %54 = vector.shape_cast %51 : vector<8x128xf32> to vector<1x1x8x128xf32>
      tpu.vector_store %arg5[%c0_19, %c0_20, %c0_21, %c0_22], %54 {strides = array<i32>} : memref<1x8x8x128xf32, #tpu.memory_space<vmem>>, vector<1x1x8x128xf32>,
      %c0_23 = arith.constant 0 : index
      %c4 = arith.constant 4 : index
      %c0_24 = arith.constant 0 : index
      %c0_25 = arith.constant 0 : index
      %55 = vector.load %arg5[%c0_23, %c4, %c0_24, %c0_25] : memref<1x8x8x128xf32, #tpu.memory_space<vmem>>, vector<1x1x8x128xf32>
      %56 = vector.shape_cast %55 : vector<1x1x8x128xf32> to vector<8x128xf32>
      %57 = arith.addf %56, %48 : vector<8x128xf32>
      %c0_26 = arith.constant 0 : index
      %c4_27 = arith.constant 4 : index
      %c0_28 = arith.constant 0 : index
      %c0_29 = arith.constant 0 : index
      %58 = vector.load %arg5[%c0_26, %c4_27, %c0_28, %c0_29] : memref<1x8x8x128xf32, #tpu.memory_space<vmem>>, vector<1x1x8x128xf32>
      %59 = vector.shape_cast %58 : vector<1x1x8x128xf32> to vector<8x128xf32>
      %60 = vector.shape_cast %57 : vector<8x128xf32> to vector<1x1x8x128xf32>
      tpu.vector_store %arg5[%c0_26, %c4_27, %c0_28, %c0_29], %60 {strides = array<i32>} : memref<1x8x8x128xf32, #tpu.memory_space<vmem>>, vector<1x1x8x128xf32>,
      %61 = vector.extract_strided_slice %16 {offsets = [1, 0, 0], sizes = [1, 8, 128], strides = [1, 1, 1]} : vector<4x8x128xf32> to vector<1x8x128xf32>
      %62 = vector.shape_cast %61 : vector<1x8x128xf32> to vector<8x128xf32>
      %c1_i32_30 = arith.constant 1 : i32
      %63 = vector.broadcast %c1_i32_30 : i32 to vector<8x128xi32>
      %64 = arith.cmpi eq, %6, %63 : vector<8x128xi32>
      %65 = arith.extui %64 : vector<8x128xi1> to vector<8x128xi32>
      %66 = arith.sitofp %65 : vector<8x128xi32> to vector<8x128xf32>
      %67 = arith.mulf %62, %66 : vector<8x128xf32>
      %68 = arith.addf %62, %66 : vector<8x128xf32>
      %cst_31 = arith.constant 0.000000e+00 : f32
      %69 = vector.broadcast %cst_31 : f32 to vector<8x128xf32>
      %70 = arith.select %36, %67, %69 : vector<8x128xi1>, vector<8x128xf32>
      %cst_32 = arith.constant 0.000000e+00 : f32
      %71 = vector.broadcast %cst_32 : f32 to vector<8x128xf32>
      %72 = arith.select %36, %68, %71 : vector<8x128xi1>, vector<8x128xf32>
      %c0_33 = arith.constant 0 : index
      %c1 = arith.constant 1 : index
      %c0_34 = arith.constant 0 : index
      %c0_35 = arith.constant 0 : index
      %73 = vector.load %arg5[%c0_33, %c1, %c0_34, %c0_35] : memref<1x8x8x128xf32, #tpu.memory_space<vmem>>, vector<1x1x8x128xf32>
      %74 = vector.shape_cast %73 : vector<1x1x8x128xf32> to vector<8x128xf32>
      %75 = arith.addf %74, %70 : vector<8x128xf32>
      %c0_36 = arith.constant 0 : index
      %c1_37 = arith.constant 1 : index
      %c0_38 = arith.constant 0 : index
      %c0_39 = arith.constant 0 : index
      %76 = vector.load %arg5[%c0_36, %c1_37, %c0_38, %c0_39] : memref<1x8x8x128xf32, #tpu.memory_space<vmem>>, vector<1x1x8x128xf32>
      %77 = vector.shape_cast %76 : vector<1x1x8x128xf32> to vector<8x128xf32>
      %78 = vector.shape_cast %75 : vector<8x128xf32> to vector<1x1x8x128xf32>
      tpu.vector_store %arg5[%c0_36, %c1_37, %c0_38, %c0_39], %78 {strides = array<i32>} : memref<1x8x8x128xf32, #tpu.memory_space<vmem>>, vector<1x1x8x128xf32>,
      %c0_40 = arith.constant 0 : index
      %c5 = arith.constant 5 : index
      %c0_41 = arith.constant 0 : index
      %c0_42 = arith.constant 0 : index
      %79 = vector.load %arg5[%c0_40, %c5, %c0_41, %c0_42] : memref<1x8x8x128xf32, #tpu.memory_space<vmem>>, vector<1x1x8x128xf32>
      %80 = vector.shape_cast %79 : vector<1x1x8x128xf32> to vector<8x128xf32>
      %81 = arith.addf %80, %72 : vector<8x128xf32>
      %c0_43 = arith.constant 0 : index
      %c5_44 = arith.constant 5 : index
      %c0_45 = arith.constant 0 : index
      %c0_46 = arith.constant 0 : index
      %82 = vector.load %arg5[%c0_43, %c5_44, %c0_45, %c0_46] : memref<1x8x8x128xf32, #tpu.memory_space<vmem>>, vector<1x1x8x128xf32>
      %83 = vector.shape_cast %82 : vector<1x1x8x128xf32> to vector<8x128xf32>
      %84 = vector.shape_cast %81 : vector<8x128xf32> to vector<1x1x8x128xf32>
      tpu.vector_store %arg5[%c0_43, %c5_44, %c0_45, %c0_46], %84 {strides = array<i32>} : memref<1x8x8x128xf32, #tpu.memory_space<vmem>>, vector<1x1x8x128xf32>,
      %85 = vector.extract_strided_slice %16 {offsets = [2, 0, 0], sizes = [1, 8, 128], strides = [1, 1, 1]} : vector<4x8x128xf32> to vector<1x8x128xf32>
      %86 = vector.shape_cast %85 : vector<1x8x128xf32> to vector<8x128xf32>
      %c2_i32 = arith.constant 2 : i32
      %87 = vector.broadcast %c2_i32 : i32 to vector<8x128xi32>
      %88 = arith.cmpi eq, %6, %87 : vector<8x128xi32>
      %89 = arith.extui %88 : vector<8x128xi1> to vector<8x128xi32>
      %90 = arith.sitofp %89 : vector<8x128xi32> to vector<8x128xf32>
      %91 = arith.mulf %86, %90 : vector<8x128xf32>
      %92 = arith.addf %86, %90 : vector<8x128xf32>
      %cst_47 = arith.constant 0.000000e+00 : f32
      %93 = vector.broadcast %cst_47 : f32 to vector<8x128xf32>
      %94 = arith.select %36, %91, %93 : vector<8x128xi1>, vector<8x128xf32>
      %cst_48 = arith.constant 0.000000e+00 : f32
      %95 = vector.broadcast %cst_48 : f32 to vector<8x128xf32>
      %96 = arith.select %36, %92, %95 : vector<8x128xi1>, vector<8x128xf32>
      %c0_49 = arith.constant 0 : index
      %c2 = arith.constant 2 : index
      %c0_50 = arith.constant 0 : index
      %c0_51 = arith.constant 0 : index
      %97 = vector.load %arg5[%c0_49, %c2, %c0_50, %c0_51] : memref<1x8x8x128xf32, #tpu.memory_space<vmem>>, vector<1x1x8x128xf32>
      %98 = vector.shape_cast %97 : vector<1x1x8x128xf32> to vector<8x128xf32>
      %99 = arith.addf %98, %94 : vector<8x128xf32>
      %c0_52 = arith.constant 0 : index
      %c2_53 = arith.constant 2 : index
      %c0_54 = arith.constant 0 : index
      %c0_55 = arith.constant 0 : index
      %100 = vector.load %arg5[%c0_52, %c2_53, %c0_54, %c0_55] : memref<1x8x8x128xf32, #tpu.memory_space<vmem>>, vector<1x1x8x128xf32>
      %101 = vector.shape_cast %100 : vector<1x1x8x128xf32> to vector<8x128xf32>
      %102 = vector.shape_cast %99 : vector<8x128xf32> to vector<1x1x8x128xf32>
      tpu.vector_store %arg5[%c0_52, %c2_53, %c0_54, %c0_55], %102 {strides = array<i32>} : memref<1x8x8x128xf32, #tpu.memory_space<vmem>>, vector<1x1x8x128xf32>,
      %c0_56 = arith.constant 0 : index
      %c6 = arith.constant 6 : index
      %c0_57 = arith.constant 0 : index
      %c0_58 = arith.constant 0 : index
      %103 = vector.load %arg5[%c0_56, %c6, %c0_57, %c0_58] : memref<1x8x8x128xf32, #tpu.memory_space<vmem>>, vector<1x1x8x128xf32>
      %104 = vector.shape_cast %103 : vector<1x1x8x128xf32> to vector<8x128xf32>
      %105 = arith.addf %104, %96 : vector<8x128xf32>
      %c0_59 = arith.constant 0 : index
      %c6_60 = arith.constant 6 : index
      %c0_61 = arith.constant 0 : index
      %c0_62 = arith.constant 0 : index
      %106 = vector.load %arg5[%c0_59, %c6_60, %c0_61, %c0_62] : memref<1x8x8x128xf32, #tpu.memory_space<vmem>>, vector<1x1x8x128xf32>
      %107 = vector.shape_cast %106 : vector<1x1x8x128xf32> to vector<8x128xf32>
      %108 = vector.shape_cast %105 : vector<8x128xf32> to vector<1x1x8x128xf32>
      tpu.vector_store %arg5[%c0_59, %c6_60, %c0_61, %c0_62], %108 {strides = array<i32>} : memref<1x8x8x128xf32, #tpu.memory_space<vmem>>, vector<1x1x8x128xf32>,
      %109 = vector.extract_strided_slice %16 {offsets = [3, 0, 0], sizes = [1, 8, 128], strides = [1, 1, 1]} : vector<4x8x128xf32> to vector<1x8x128xf32>
      %110 = vector.shape_cast %109 : vector<1x8x128xf32> to vector<8x128xf32>
      %c3_i32 = arith.constant 3 : i32
      %111 = vector.broadcast %c3_i32 : i32 to vector<8x128xi32>
      %112 = arith.cmpi eq, %6, %111 : vector<8x128xi32>
      %113 = arith.extui %112 : vector<8x128xi1> to vector<8x128xi32>
      %114 = arith.sitofp %113 : vector<8x128xi32> to vector<8x128xf32>
      %115 = arith.mulf %110, %114 : vector<8x128xf32>
      %116 = arith.addf %110, %114 : vector<8x128xf32>
      %cst_63 = arith.constant 0.000000e+00 : f32
      %117 = vector.broadcast %cst_63 : f32 to vector<8x128xf32>
      %118 = arith.select %36, %115, %117 : vector<8x128xi1>, vector<8x128xf32>
      %cst_64 = arith.constant 0.000000e+00 : f32
      %119 = vector.broadcast %cst_64 : f32 to vector<8x128xf32>
      %120 = arith.select %36, %116, %119 : vector<8x128xi1>, vector<8x128xf32>
      %c0_65 = arith.constant 0 : index
      %c3 = arith.constant 3 : index
      %c0_66 = arith.constant 0 : index
      %c0_67 = arith.constant 0 : index
      %121 = vector.load %arg5[%c0_65, %c3, %c0_66, %c0_67] : memref<1x8x8x128xf32, #tpu.memory_space<vmem>>, vector<1x1x8x128xf32>
      %122 = vector.shape_cast %121 : vector<1x1x8x128xf32> to vector<8x128xf32>
      %123 = arith.addf %122, %118 : vector<8x128xf32>
      %c0_68 = arith.constant 0 : index
      %c3_69 = arith.constant 3 : index
      %c0_70 = arith.constant 0 : index
      %c0_71 = arith.constant 0 : index
      %124 = vector.load %arg5[%c0_68, %c3_69, %c0_70, %c0_71] : memref<1x8x8x128xf32, #tpu.memory_space<vmem>>, vector<1x1x8x128xf32>
      %125 = vector.shape_cast %124 : vector<1x1x8x128xf32> to vector<8x128xf32>
      %126 = vector.shape_cast %123 : vector<8x128xf32> to vector<1x1x8x128xf32>
      tpu.vector_store %arg5[%c0_68, %c3_69, %c0_70, %c0_71], %126 {strides = array<i32>} : memref<1x8x8x128xf32, #tpu.memory_space<vmem>>, vector<1x1x8x128xf32>,
      %c0_72 = arith.constant 0 : index
      %c7 = arith.constant 7 : index
      %c0_73 = arith.constant 0 : index
      %c0_74 = arith.constant 0 : index
      %127 = vector.load %arg5[%c0_72, %c7, %c0_73, %c0_74] : memref<1x8x8x128xf32, #tpu.memory_space<vmem>>, vector<1x1x8x128xf32>
      %128 = vector.shape_cast %127 : vector<1x1x8x128xf32> to vector<8x128xf32>
      %129 = arith.addf %128, %120 : vector<8x128xf32>
      %c0_75 = arith.constant 0 : index
      %c7_76 = arith.constant 7 : index
      %c0_77 = arith.constant 0 : index
      %c0_78 = arith.constant 0 : index
      %130 = vector.load %arg5[%c0_75, %c7_76, %c0_77, %c0_78] : memref<1x8x8x128xf32, #tpu.memory_space<vmem>>, vector<1x1x8x128xf32>
      %131 = vector.shape_cast %130 : vector<1x1x8x128xf32> to vector<8x128xf32>
      %132 = vector.shape_cast %129 : vector<8x128xf32> to vector<1x1x8x128xf32>
      tpu.vector_store %arg5[%c0_75, %c7_76, %c0_77, %c0_78], %132 {strides = array<i32>} : memref<1x8x8x128xf32, #tpu.memory_space<vmem>>, vector<1x1x8x128xf32>,
    } else {
    }
    %true = arith.constant true
    %24 = arith.xori %21, %true : i1
    %25 = arith.extui %24 : i1 to i32
    %c0_i32_10 = arith.constant 0 : i32
    %26 = arith.cmpi ne, %25, %c0_i32_10 : i32
    scf.if %26 {
      %27 = vector.extract_strided_slice %16 {offsets = [0, 0, 0], sizes = [1, 8, 128], strides = [1, 1, 1]} : vector<4x8x128xf32> to vector<1x8x128xf32>
      %28 = vector.shape_cast %27 : vector<1x8x128xf32> to vector<8x128xf32>
      %c0_i32_11 = arith.constant 0 : i32
      %29 = vector.broadcast %c0_i32_11 : i32 to vector<8x128xi32>
      %30 = arith.cmpi eq, %6, %29 : vector<8x128xi32>
      %31 = arith.extui %30 : vector<8x128xi1> to vector<8x128xi32>
      %32 = arith.sitofp %31 : vector<8x128xi32> to vector<8x128xf32>
      %33 = arith.mulf %28, %32 : vector<8x128xf32>
      %34 = arith.addf %28, %32 : vector<8x128xf32>
      %c0_12 = arith.constant 0 : index
      %c0_13 = arith.constant 0 : index
      %c0_14 = arith.constant 0 : index
      %c0_15 = arith.constant 0 : index
      %35 = vector.load %arg5[%c0_12, %c0_13, %c0_14, %c0_15] : memref<1x8x8x128xf32, #tpu.memory_space<vmem>>, vector<1x1x8x128xf32>
      %36 = vector.shape_cast %35 : vector<1x1x8x128xf32> to vector<8x128xf32>
      %37 = arith.addf %36, %33 : vector<8x128xf32>
      %c0_16 = arith.constant 0 : index
      %c0_17 = arith.constant 0 : index
      %c0_18 = arith.constant 0 : index
      %c0_19 = arith.constant 0 : index
      %38 = vector.load %arg5[%c0_16, %c0_17, %c0_18, %c0_19] : memref<1x8x8x128xf32, #tpu.memory_space<vmem>>, vector<1x1x8x128xf32>
      %39 = vector.shape_cast %38 : vector<1x1x8x128xf32> to vector<8x128xf32>
      %40 = vector.shape_cast %37 : vector<8x128xf32> to vector<1x1x8x128xf32>
      tpu.vector_store %arg5[%c0_16, %c0_17, %c0_18, %c0_19], %40 {strides = array<i32>} : memref<1x8x8x128xf32, #tpu.memory_space<vmem>>, vector<1x1x8x128xf32>,
      %c0_20 = arith.constant 0 : index
      %c4 = arith.constant 4 : index
      %c0_21 = arith.constant 0 : index
      %c0_22 = arith.constant 0 : index
      %41 = vector.load %arg5[%c0_20, %c4, %c0_21, %c0_22] : memref<1x8x8x128xf32, #tpu.memory_space<vmem>>, vector<1x1x8x128xf32>
      %42 = vector.shape_cast %41 : vector<1x1x8x128xf32> to vector<8x128xf32>
      %43 = arith.addf %42, %34 : vector<8x128xf32>
      %c0_23 = arith.constant 0 : index
      %c4_24 = arith.constant 4 : index
      %c0_25 = arith.constant 0 : index
      %c0_26 = arith.constant 0 : index
      %44 = vector.load %arg5[%c0_23, %c4_24, %c0_25, %c0_26] : memref<1x8x8x128xf32, #tpu.memory_space<vmem>>, vector<1x1x8x128xf32>
      %45 = vector.shape_cast %44 : vector<1x1x8x128xf32> to vector<8x128xf32>
      %46 = vector.shape_cast %43 : vector<8x128xf32> to vector<1x1x8x128xf32>
      tpu.vector_store %arg5[%c0_23, %c4_24, %c0_25, %c0_26], %46 {strides = array<i32>} : memref<1x8x8x128xf32, #tpu.memory_space<vmem>>, vector<1x1x8x128xf32>,
      %47 = vector.extract_strided_slice %16 {offsets = [1, 0, 0], sizes = [1, 8, 128], strides = [1, 1, 1]} : vector<4x8x128xf32> to vector<1x8x128xf32>
      %48 = vector.shape_cast %47 : vector<1x8x128xf32> to vector<8x128xf32>
      %c1_i32_27 = arith.constant 1 : i32
      %49 = vector.broadcast %c1_i32_27 : i32 to vector<8x128xi32>
      %50 = arith.cmpi eq, %6, %49 : vector<8x128xi32>
      %51 = arith.extui %50 : vector<8x128xi1> to vector<8x128xi32>
      %52 = arith.sitofp %51 : vector<8x128xi32> to vector<8x128xf32>
      %53 = arith.mulf %48, %52 : vector<8x128xf32>
      %54 = arith.addf %48, %52 : vector<8x128xf32>
      %c0_28 = arith.constant 0 : index
      %c1 = arith.constant 1 : index
      %c0_29 = arith.constant 0 : index
      %c0_30 = arith.constant 0 : index
      %55 = vector.load %arg5[%c0_28, %c1, %c0_29, %c0_30] : memref<1x8x8x128xf32, #tpu.memory_space<vmem>>, vector<1x1x8x128xf32>
      %56 = vector.shape_cast %55 : vector<1x1x8x128xf32> to vector<8x128xf32>
      %57 = arith.addf %56, %53 : vector<8x128xf32>
      %c0_31 = arith.constant 0 : index
      %c1_32 = arith.constant 1 : index
      %c0_33 = arith.constant 0 : index
      %c0_34 = arith.constant 0 : index
      %58 = vector.load %arg5[%c0_31, %c1_32, %c0_33, %c0_34] : memref<1x8x8x128xf32, #tpu.memory_space<vmem>>, vector<1x1x8x128xf32>
      %59 = vector.shape_cast %58 : vector<1x1x8x128xf32> to vector<8x128xf32>
      %60 = vector.shape_cast %57 : vector<8x128xf32> to vector<1x1x8x128xf32>
      tpu.vector_store %arg5[%c0_31, %c1_32, %c0_33, %c0_34], %60 {strides = array<i32>} : memref<1x8x8x128xf32, #tpu.memory_space<vmem>>, vector<1x1x8x128xf32>,
      %c0_35 = arith.constant 0 : index
      %c5 = arith.constant 5 : index
      %c0_36 = arith.constant 0 : index
      %c0_37 = arith.constant 0 : index
      %61 = vector.load %arg5[%c0_35, %c5, %c0_36, %c0_37] : memref<1x8x8x128xf32, #tpu.memory_space<vmem>>, vector<1x1x8x128xf32>
      %62 = vector.shape_cast %61 : vector<1x1x8x128xf32> to vector<8x128xf32>
      %63 = arith.addf %62, %54 : vector<8x128xf32>
      %c0_38 = arith.constant 0 : index
      %c5_39 = arith.constant 5 : index
      %c0_40 = arith.constant 0 : index
      %c0_41 = arith.constant 0 : index
      %64 = vector.load %arg5[%c0_38, %c5_39, %c0_40, %c0_41] : memref<1x8x8x128xf32, #tpu.memory_space<vmem>>, vector<1x1x8x128xf32>
      %65 = vector.shape_cast %64 : vector<1x1x8x128xf32> to vector<8x128xf32>
      %66 = vector.shape_cast %63 : vector<8x128xf32> to vector<1x1x8x128xf32>
      tpu.vector_store %arg5[%c0_38, %c5_39, %c0_40, %c0_41], %66 {strides = array<i32>} : memref<1x8x8x128xf32, #tpu.memory_space<vmem>>, vector<1x1x8x128xf32>,
      %67 = vector.extract_strided_slice %16 {offsets = [2, 0, 0], sizes = [1, 8, 128], strides = [1, 1, 1]} : vector<4x8x128xf32> to vector<1x8x128xf32>
      %68 = vector.shape_cast %67 : vector<1x8x128xf32> to vector<8x128xf32>
      %c2_i32 = arith.constant 2 : i32
      %69 = vector.broadcast %c2_i32 : i32 to vector<8x128xi32>
      %70 = arith.cmpi eq, %6, %69 : vector<8x128xi32>
      %71 = arith.extui %70 : vector<8x128xi1> to vector<8x128xi32>
      %72 = arith.sitofp %71 : vector<8x128xi32> to vector<8x128xf32>
      %73 = arith.mulf %68, %72 : vector<8x128xf32>
      %74 = arith.addf %68, %72 : vector<8x128xf32>
      %c0_42 = arith.constant 0 : index
      %c2 = arith.constant 2 : index
      %c0_43 = arith.constant 0 : index
      %c0_44 = arith.constant 0 : index
      %75 = vector.load %arg5[%c0_42, %c2, %c0_43, %c0_44] : memref<1x8x8x128xf32, #tpu.memory_space<vmem>>, vector<1x1x8x128xf32>
      %76 = vector.shape_cast %75 : vector<1x1x8x128xf32> to vector<8x128xf32>
      %77 = arith.addf %76, %73 : vector<8x128xf32>
      %c0_45 = arith.constant 0 : index
      %c2_46 = arith.constant 2 : index
      %c0_47 = arith.constant 0 : index
      %c0_48 = arith.constant 0 : index
      %78 = vector.load %arg5[%c0_45, %c2_46, %c0_47, %c0_48] : memref<1x8x8x128xf32, #tpu.memory_space<vmem>>, vector<1x1x8x128xf32>
      %79 = vector.shape_cast %78 : vector<1x1x8x128xf32> to vector<8x128xf32>
      %80 = vector.shape_cast %77 : vector<8x128xf32> to vector<1x1x8x128xf32>
      tpu.vector_store %arg5[%c0_45, %c2_46, %c0_47, %c0_48], %80 {strides = array<i32>} : memref<1x8x8x128xf32, #tpu.memory_space<vmem>>, vector<1x1x8x128xf32>,
      %c0_49 = arith.constant 0 : index
      %c6 = arith.constant 6 : index
      %c0_50 = arith.constant 0 : index
      %c0_51 = arith.constant 0 : index
      %81 = vector.load %arg5[%c0_49, %c6, %c0_50, %c0_51] : memref<1x8x8x128xf32, #tpu.memory_space<vmem>>, vector<1x1x8x128xf32>
      %82 = vector.shape_cast %81 : vector<1x1x8x128xf32> to vector<8x128xf32>
      %83 = arith.addf %82, %74 : vector<8x128xf32>
      %c0_52 = arith.constant 0 : index
      %c6_53 = arith.constant 6 : index
      %c0_54 = arith.constant 0 : index
      %c0_55 = arith.constant 0 : index
      %84 = vector.load %arg5[%c0_52, %c6_53, %c0_54, %c0_55] : memref<1x8x8x128xf32, #tpu.memory_space<vmem>>, vector<1x1x8x128xf32>
      %85 = vector.shape_cast %84 : vector<1x1x8x128xf32> to vector<8x128xf32>
      %86 = vector.shape_cast %83 : vector<8x128xf32> to vector<1x1x8x128xf32>
      tpu.vector_store %arg5[%c0_52, %c6_53, %c0_54, %c0_55], %86 {strides = array<i32>} : memref<1x8x8x128xf32, #tpu.memory_space<vmem>>, vector<1x1x8x128xf32>,
      %87 = vector.extract_strided_slice %16 {offsets = [3, 0, 0], sizes = [1, 8, 128], strides = [1, 1, 1]} : vector<4x8x128xf32> to vector<1x8x128xf32>
      %88 = vector.shape_cast %87 : vector<1x8x128xf32> to vector<8x128xf32>
      %c3_i32 = arith.constant 3 : i32
      %89 = vector.broadcast %c3_i32 : i32 to vector<8x128xi32>
      %90 = arith.cmpi eq, %6, %89 : vector<8x128xi32>
      %91 = arith.extui %90 : vector<8x128xi1> to vector<8x128xi32>
      %92 = arith.sitofp %91 : vector<8x128xi32> to vector<8x128xf32>
      %93 = arith.mulf %88, %92 : vector<8x128xf32>
      %94 = arith.addf %88, %92 : vector<8x128xf32>
      %c0_56 = arith.constant 0 : index
      %c3 = arith.constant 3 : index
      %c0_57 = arith.constant 0 : index
      %c0_58 = arith.constant 0 : index
      %95 = vector.load %arg5[%c0_56, %c3, %c0_57, %c0_58] : memref<1x8x8x128xf32, #tpu.memory_space<vmem>>, vector<1x1x8x128xf32>
      %96 = vector.shape_cast %95 : vector<1x1x8x128xf32> to vector<8x128xf32>
      %97 = arith.addf %96, %93 : vector<8x128xf32>
      %c0_59 = arith.constant 0 : index
      %c3_60 = arith.constant 3 : index
      %c0_61 = arith.constant 0 : index
      %c0_62 = arith.constant 0 : index
      %98 = vector.load %arg5[%c0_59, %c3_60, %c0_61, %c0_62] : memref<1x8x8x128xf32, #tpu.memory_space<vmem>>, vector<1x1x8x128xf32>
      %99 = vector.shape_cast %98 : vector<1x1x8x128xf32> to vector<8x128xf32>
      %100 = vector.shape_cast %97 : vector<8x128xf32> to vector<1x1x8x128xf32>
      tpu.vector_store %arg5[%c0_59, %c3_60, %c0_61, %c0_62], %100 {strides = array<i32>} : memref<1x8x8x128xf32, #tpu.memory_space<vmem>>, vector<1x1x8x128xf32>,
      %c0_63 = arith.constant 0 : index
      %c7 = arith.constant 7 : index
      %c0_64 = arith.constant 0 : index
      %c0_65 = arith.constant 0 : index
      %101 = vector.load %arg5[%c0_63, %c7, %c0_64, %c0_65] : memref<1x8x8x128xf32, #tpu.memory_space<vmem>>, vector<1x1x8x128xf32>
      %102 = vector.shape_cast %101 : vector<1x1x8x128xf32> to vector<8x128xf32>
      %103 = arith.addf %102, %94 : vector<8x128xf32>
      %c0_66 = arith.constant 0 : index
      %c7_67 = arith.constant 7 : index
      %c0_68 = arith.constant 0 : index
      %c0_69 = arith.constant 0 : index
      %104 = vector.load %arg5[%c0_66, %c7_67, %c0_68, %c0_69] : memref<1x8x8x128xf32, #tpu.memory_space<vmem>>, vector<1x1x8x128xf32>
      %105 = vector.shape_cast %104 : vector<1x1x8x128xf32> to vector<8x128xf32>
      %106 = vector.shape_cast %103 : vector<8x128xf32> to vector<1x1x8x128xf32>
      tpu.vector_store %arg5[%c0_66, %c7_67, %c0_68, %c0_69], %106 {strides = array<i32>} : memref<1x8x8x128xf32, #tpu.memory_space<vmem>>, vector<1x1x8x128xf32>,
    } else {
    }
    return
  }
  func.func @transform_0(%arg0: i32, %arg1: i32, %arg2: i32) -> (i32, i32, i32, i32) {
    %c1_i32 = arith.constant 1 : i32
    %0 = arith.muli %arg1, %c1_i32 : i32
    %1 = arith.addi %0, %arg2 : i32
    %c0_i32 = arith.constant 0 : i32
    %c0_i32_0 = arith.constant 0 : i32
    %c0_i32_1 = arith.constant 0 : i32
    return %arg0, %c0_i32, %1, %c0_i32_0 : i32, i32, i32, i32
  }
  func.func @transform_1(%arg0: i32, %arg1: i32, %arg2: i32) -> (i32, i32, i32) {
    %c1_i32 = arith.constant 1 : i32
    %0 = arith.muli %arg1, %c1_i32 : i32
    %1 = arith.addi %0, %arg2 : i32
    %c0_i32 = arith.constant 0 : i32
    %c0_i32_0 = arith.constant 0 : i32
    return %arg0, %1, %c0_i32 : i32, i32, i32
  }
  func.func @transform_2(%arg0: i32, %arg1: i32, %arg2: i32) -> (i32, i32, i32, i32) {
    %c1_i32 = arith.constant 1 : i32
    %0 = arith.muli %arg0, %c1_i32 : i32
    %1 = arith.addi %0, %arg1 : i32
    %c0_i32 = arith.constant 0 : i32
    %c0_i32_0 = arith.constant 0 : i32
    %c0_i32_1 = arith.constant 0 : i32
    %c0_i32_2 = arith.constant 0 : i32
    return %1, %c0_i32, %c0_i32_0, %c0_i32_1 : i32, i32, i32, i32
  }
}

</mosaic_0001>

<bundles_post_ra>
// kernel: dice_loss.1
= control target key start
LH: loop header
LB: loop body
LE: loop exit
PB: predicated region body
PF: predicated region fallthrough
CT: control target
= control target key end

     0   :  { %s608_s9 = smov 0   ;;  %s610_s10 = smov 0   ;;  %s657_s0 = inlined_call_operand.vmem [shape: f32[2,4,8,128], index: 0, kind: input, shape index: {}]   ;;  %s658_s1 = inlined_call_operand.vmem [shape: s32[2,8,128], index: 1, kind: input, shape index: {}]   ;;  %s659_s2 = inlined_call_operand.vmem [shape: f32[2,8,8,128], index: 2, kind: output, shape index: {}]  }
   0x1   :  { %s612_s11 = smov 0  }
   0x2 LB: > { %s31_s12 = sadd.s32 1, %s586_s10  ;;  %p487_p0 = scmp.ge.s32.totalorder %s590_s11, 1  ;;  %s590_s11 = sphi %s612_s11, %s12_s11   ;;  %s586_s10 = sphi %s610_s10, %s661_s10   ;;  %s582_s9 = sphi %s608_s9, %s660_s9  }
   0x3   : > { %p33_p1 = scmp.ge.s32.totalorder %s31_s12, 2  ;;  %p160_p2 = scmp.lt.s32.totalorder %s590_s11, 3 }
   0x5   : > { %s663_s12 = smov (%p33_p1, %s31_s12), 0  ;;  %p161_p3 = pnand %p487_p0, %p160_p2 }
   0x6   : > { %p196_p4 = scmp.lt.s32.totalorder (!%p161_p3), %s582_s9, 1  ;;  %v268_v21 = vlaneseq (!%p161_p3)  ;;  %v592_v29 = vmov (!%p161_p3), 0.0  }
   0x7   : > { %164 = sbr.rel (%p161_p3) target bundleno = 65 (0x41), region = 28 }
   0x8   : > { %v269_v23 = vshrl.u32 (!%p161_p3), %v268_v21, 7  ;;  %v271_v25 = vand.u32 (!%p161_p3), 127, %v268_v21 }
   0xa   : > { %v275_v26 = vmul.u32 (!%p161_p3), 128, %v269_v23 }
   0xc   : > { %v276_v27 = vadd.s32 (!%p161_p3), %v275_v26, %v271_v25 }
   0xe   : > { %s665_s9 = smov (!%p196_p4, %s582_s9), 1  ;;  %vm277_vm4 = vcmp.lt.s32.totalorder %v276_v27, 256 }
   0xf   : > { %s531_s13 = sshll.u32 %s665_s9, 5  ;;  %s490_s17 = sshll.u32 %s665_s9, 3 }
  0x10   : > { %s203_s16 = scalar_lea.vmem %s657_s0, %s531_s13  ;;  %s212_s20 = scalar_lea.vmem %s658_s1, %s490_s17 }
  0x11   : > { %v233_v0 = vld [vmem:[%s203_s16] sm:$0xff]  ;;  %v234_v1 = vld [vmem:[%s203_s16 + $0x8] sm:$0xff]  ;;  %v235_v2 = vld [vmem:[%s203_s16 + $0x10] sm:$0xff]  ;;  %s532_s21 = sshll.u32 %s665_s9, 6 }
  0x12   : > { %v236_v3 = vld [vmem:[%s203_s16 + $0x18] sm:$0xff]  ;;  %v238_v4 = vmax.f32 %v233_v0, %v234_v1  ;;  %v237_v24 = vld [vmem:[%s212_s20] sm:$0xff]  ;;  %s219_s24 = scalar_lea.vmem %s659_s2, %s532_s21 }
  0x13   : > { %v239_v5 = vmax.f32 %v235_v2, %v236_v3  ;;  %vm278_vm0 = vcmp.eq.s32.totalorder %v237_v24, 0  ;;  %vm292_vm1 = vcmp.eq.s32.totalorder %v237_v24, 1  ;;  %vm307_vm2 = vcmp.eq.s32.totalorder %v237_v24, 2 }
  0x14   : > { %vm322_vm3 = vcmp.eq.s32.totalorder %v237_v24, 3  ;;  %v493_v30 = vsel %vm278_vm0, 1.0, %v592_v29  ;;  %v496_v31 = vsel %vm292_vm1, 1.0, %v592_v29  ;;  %v501_v32 = vsel %vm307_vm2, 1.0, %v592_v29 }
  0x15   : > { %v240_v6 = vmax.f32 %v238_v4, %v239_v5  ;;  %v506_v33 = vsel %vm322_vm3, 1.0, %v592_v29 }
  0x17   : > { %v241_v7 = vsub.f32 %v233_v0, %v240_v6  ;;  %v242_v8 = vsub.f32 %v234_v1, %v240_v6  ;;  %v243_v9 = vsub.f32 %v235_v2, %v240_v6  ;;  %v244_v10 = vsub.f32 %v236_v3, %v240_v6 }
  0x19   : > { %v245_v11 = vmul.f32 1.442695, %v241_v7  ;;  %v247_v12 = vmul.f32 1.442695, %v242_v8  ;;  %v249_v13 = vmul.f32 1.442695, %v243_v9 }
  0x1a   : > { %v251_v14 = vmul.f32 1.442695, %v244_v10 }
  0x1b   : > { %558 = vpow2.f32 %v245_v11 }
  0x1c   : > { %560 = vpow2.f32 %v247_v12 }
  0x1d   : > { %562 = vpow2.f32 %v249_v13 }
  0x1e   : > { %564 = vpow2.f32 %v251_v14 }
  0x25   : > { %v559_v15 = vpop.eup %558 }
  0x26   : > { %v561_v16 = vpop.eup %560 }
  0x27   : > { %v563_v17 = vpop.eup %562  ;;  %v253_v18 = vadd.f32 %v561_v16, %v559_v15 }
  0x28   : > { %v565_v19 = vpop.eup %564 }
  0x29   : > { %v254_v20 = vadd.f32 %v563_v17, %v253_v18 }
  0x2b   : > { %v255_v22 = vadd.f32 %v565_v19, %v254_v20 }
  0x2d   : > { %566 = vrcp.f32 %v255_v22 }
  0x37   : > { %v567_v28 = vpop.eup %566 }
  0x38   : > { %v257_v34 = vmul.f32 %v567_v28, %v559_v15  ;;  %v258_v35 = vmul.f32 %v567_v28, %v561_v16  ;;  %v259_v36 = vmul.f32 %v567_v28, %v563_v17  ;;  %v260_v37 = vmul.f32 %v567_v28, %v565_v19 }
  0x3a   : > { %v281_v38 = vmul.f32 %v493_v30, %v257_v34  ;;  %v282_v39 = vadd.f32 %v493_v30, %v257_v34  ;;  %v295_v40 = vmul.f32 %v496_v31, %v258_v35  ;;  %v296_v41 = vadd.f32 %v496_v31, %v258_v35 }
  0x3b   : > { %v310_v42 = vmul.f32 %v501_v32, %v259_v36  ;;  %v311_v43 = vadd.f32 %v501_v32, %v259_v36  ;;  %v325_v44 = vmul.f32 %v506_v33, %v260_v37  ;;  %v326_v45 = vadd.f32 %v506_v33, %v260_v37 }
  0x3c   : > { %v283_v46 = vsel %vm277_vm4, %v281_v38, 0.0  ;;  %v284_v47 = vsel %vm277_vm4, %v282_v39, 0.0  ;;  %v297_v48 = vsel %vm277_vm4, %v295_v40, 0.0  ;;  %v298_v49 = vsel %vm277_vm4, %v296_v41, 0.0 }
  0x3d   : > { %v312_v50 = vsel %vm277_vm4, %v310_v42, 0.0  ;;  %v313_v51 = vsel %vm277_vm4, %v311_v43, 0.0  ;;  %v327_v52 = vsel %vm277_vm4, %v325_v44, 0.0  ;;  %v328_v53 = vsel %vm277_vm4, %v326_v45, 0.0  ;;  %287 = vst [vmem:[%s219_s24] sm:$0xff] %v283_v46  ;;  %495 = vst [vmem:[%s219_s24 + $0x20] sm:$0xff] %v284_v47 }
  0x3e   : > { %498 = vst [vmem:[%s219_s24 + $0x8] sm:$0xff] %v297_v48  ;;  %500 = vst [vmem:[%s219_s24 + $0x28] sm:$0xff] %v298_v49 }
  0x3f   : > { %503 = vst [vmem:[%s219_s24 + $0x10] sm:$0xff] %v312_v50  ;;  %505 = vst [vmem:[%s219_s24 + $0x30] sm:$0xff] %v313_v51 }
  0x40   : > { %508 = vst [vmem:[%s219_s24 + $0x18] sm:$0xff] %v327_v52  ;;  %510 = vst [vmem:[%s219_s24 + $0x38] sm:$0xff] %v328_v53 }
  0x41 PF: > { %s12_s11 = sadd.s32 1, %s590_s11   ;;  %s660_s9 = smov %s586_s10 }
  0x42   : > { %p9_p5 = scmp.ge.s32.totalorder %s12_s11, 4   ;;  %s661_s10 = smov %s663_s12 }
  0x44   :  { %11 = sbr.rel (!%p9_p5) target bundleno = 2 (0x2), region = 87 }

</bundles_post_ra>
